<compile_context>
chip_gen: v7x
topology: tpu7x:2x2x1
jax: 0.10.0
libtpu: 0.0.40
codegen_flags: <defaults>
</compile_context>

<pallas_src>
import jax
import jax.numpy as jnp
from jax.experimental import pallas as pl
from jax.experimental.pallas import tpu as pltpu


def _round_up(x: int, m: int) -> int:
    return ((x + m - 1) // m) * m


def _make_logits_kernel(compute_dtype):
    def kernel(emb_ref, cls_ref, out_ref):
        # emb_ref: (TB, D)  f32 node-embedding tile; cast to compute dtype in VMEM (near-free VPU op)
        # cls_ref: (Cp, D)  class embeddings, already compute_dtype + lane-padded, resident
        # out_ref: (TB, Cp) lane-dense logits tile
        out_ref[...] = jax.lax.dot_general(
            emb_ref[...].astype(compute_dtype),
            cls_ref[...],
            dimension_numbers=(((1,), (1,)), ((), ())),   # contract shared D (last) axis
            preferred_element_type=jnp.float32,           # f32 MXU accumulation
        ).astype(out_ref.dtype)
    return kernel


def label_graph_node_classifier_forward(embeddings: jax.Array,
                                        class_node_embeddings: jax.Array,
                                        n_classes: int,
                                        *,
                                        batch_tile: int = 512,
                                        compute_dtype=jnp.bfloat16,
                                        out_dtype=jnp.float32,
                                        trim_padding: bool = False) -> jax.Array:
    """logits = embeddings @ (HGT(cls_emb)[:n_classes]).T  (HGT = identity stand-in).

    Returns (B, Cp) with Cp = n_classes rounded up to a multiple of 128; columns >= n_classes are
    exactly 0.0.  Pass trim_padding=True to get the exact (B, n_classes) array of the PyTorch
    module (costs one extra XLA copy of the logits).
    """
    B, D = embeddings.shape

    # Steps 2/3: HGT embedder stand-in (identity) + eval-mode dropout (identity).
    # Step 4: 'classes is None' branch -> first n_classes label-graph nodes.
    cls_emb = class_node_embeddings[:n_classes]
    C = cls_emb.shape[0]

    # Lane-dense output: pad the class dim to a multiple of 128.  This + the cast touches only
    # C*D elements (tiny vs. B*D / B*Cp), so it stays in the wrapper; the big embedding cast is
    # done inside the kernel.
    Cp = _round_up(C, 128)
    ec = jnp.dtype(compute_dtype).itemsize
    eo = jnp.dtype(out_dtype).itemsize
    if Cp == C:
        cls_c = cls_emb.astype(compute_dtype)
    else:
        cls_c = jnp.zeros((Cp, D), compute_dtype).at[:C, :].set(cls_emb.astype(compute_dtype))

    # ---- per-generation VMEM budget (128 MiB v5e/v6e, 64 MiB v7x) -------------------------------
    try:
        vmem_capacity = int(pltpu.get_tpu_info().vmem_capacity_bytes)
    except Exception:
        vmem_capacity = 64 * 1024 * 1024          # conservative (v7x) fallback
    budget = int(0.70 * vmem_capacity)

    cls_bytes = Cp * D * ec                        # single-buffered resident class block
    if cls_bytes > budget:
        raise ValueError(
            "class-embedding block (%d bytes) exceeds the VMEM budget; tile the class dimension"
            % cls_bytes)

    def footprint(tb):
        return (2 * tb * D * 4        # double-buffered f32 embedding tile
                + 2 * tb * Cp * eo    # double-buffered output tile
                + cls_bytes
                + (2 << 20))          # regalloc / scratch headroom

    # ---- batch tile selection --------------------------------------------------------------------
    tb = max(16, (int(batch_tile) // 16) * 16)
    tb = min(tb, _round_up(B, 16))                         # don't compute on pure padding
    if pl.cdiv(B, tb) == 1 and B > 256:
        # Keep >=2 grid steps when the batch is big enough: v7x megacore uses both TensorCores.
        tb = max(128, _round_up((B + 1) // 2, 16))
    while footprint(tb) > budget and tb > 64:              # shrink the tile until it fits
        tb = max(64, ((tb // 2) // 16) * 16)

    grid = (pl.cdiv(B, tb),)
    vmem_limit = int(min(vmem_capacity - (8 << 20),
                         max(footprint(tb) + (16 << 20), 32 << 20)))

    cost = pl.CostEstimate(
        flops=2 * B * D * Cp,
        transcendentals=0,
        bytes_accessed=B * D * embeddings.dtype.itemsize + Cp * D * ec + B * Cp * eo,
    )

    kernel = _make_logits_kernel(compute_dtype)
    out_shape = jax.ShapeDtypeStruct((B, Cp), out_dtype)
    compiler_params = pltpu.CompilerParams(
        dimension_semantics=("parallel",),
        vmem_limit_bytes=vmem_limit,
    )

    def build(single_buffer_cls: bool):
        cls_kwargs = dict(pipeline_mode=pl.Buffered(1)) if single_buffer_cls else {}
        return pl.pallas_call(
            kernel,
            out_shape=out_shape,
            grid_spec=pl.GridSpec(
                grid=grid,
                in_specs=[
                    # node embeddings (f32): tiled along batch, cast inside the kernel
                    pl.BlockSpec((tb, D), lambda i: (i, 0)),
                    # class embeddings: constant block index -> fetched once, resident
                    pl.BlockSpec((Cp, D), lambda i: (0, 0), **cls_kwargs),
                ],
                out_specs=pl.BlockSpec((tb, Cp), lambda i: (i, 0)),
            ),
            compiler_params=compiler_params,
            cost_estimate=cost,
        )

    try:
        # Constant-index class block needs only one VMEM buffer (no re-fetch across the grid).
        logits_padded = build(True)(embeddings, cls_c)
    except Exception:
        # Graceful fallback if this jax build rejects Buffered(1) on grid pipelines.
        logits_padded = build(False)(embeddings, cls_c)

    if trim_padding and Cp != C:
        # Minor-dim slice = full XLA copy of the logits; only do it when explicitly requested.
        return logits_padded[:, :C]
    return logits_padded


if __name__ == "__main__":
    # Small, module-consistent shapes:
    #   embedding_dim = 128, n_classes = 64, label-graph nodes = 80,
    #   batch = 200 input nodes (ragged w.r.t. the tile to exercise the cdiv grid / masked edge).
    B, D = 200, 128          # embeddings: [batch, embedding_dim]
    N_CLS_NODES = 80         # self.g.num_nodes('_N')
    N_CLASSES = 64           # hparams.n_classes

    key = jax.random.PRNGKey(0)
    k_emb, k_cls = jax.random.split(key)

    # Input node embeddings (would come from the upstream encoder).
    embeddings = jax.random.normal(k_emb, (B, D), dtype=jnp.float32)

    # Deterministic synthetic parameters: nn.Embedding(num_nodes, embedding_dim) weight table
    # for the single node type '_N' of the label graph.
    class_node_embeddings = (
        jax.random.normal(k_cls, (N_CLS_NODES, D), dtype=jnp.float32) * 0.02
    )

    logits_padded = label_graph_node_classifier_forward(
        embeddings, class_node_embeddings, N_CLASSES
    )
    logits_padded = jax.block_until_ready(logits_padded)

    Cp = _round_up(N_CLASSES, 128)
    assert logits_padded.shape == (B, Cp), logits_padded.shape

    # Reference check against plain JAX using the same bf16-operand / f32-accumulate numerics.
    # (NOTE: bf16 operands differ from the PyTorch f32 matmul by ~1e-2 rel; pass
    #  compute_dtype=jnp.float32 to the wrapper for full-precision operands if required.)
    ref = (embeddings.astype(jnp.bfloat16).astype(jnp.float32)
           @ class_node_embeddings[:N_CLASSES].astype(jnp.bfloat16).astype(jnp.float32).T)
    valid = logits_padded[:, :N_CLASSES]
    pad = logits_padded[:, N_CLASSES:]
    assert bool(jnp.allclose(valid, ref, atol=5e-3, rtol=5e-3)), "mismatch vs reference"
    assert bool(jnp.all(pad == 0.0)), "padded logit columns must be exactly zero"

    print("KERNEL_OK")
</pallas_src>

<mosaic_0001>
module attributes {stable_mosaic.version = 11 : i64} {
  func.func @kernel(%arg0: i32, %arg1: memref<208x128xf32, #tpu.memory_space<vmem>>, %arg2: memref<128x128xbf16, #tpu.memory_space<vmem>>, %arg3: memref<208x128xf32, #tpu.memory_space<vmem>>) attributes {dimension_semantics = [#tpu.dimension_semantics<parallel>], iteration_bounds = array<i64: 1>, scalar_prefetch = 0 : i64, scratch_operands = 0 : i64, tpu.core_type = #tpu.core_type<tc>, window_params = [{transform_indices = @transform_0, window_bounds = array<i64: 208, 128>}, {pipeline_mode = #tpu.pipeline_mode<synchronous>, transform_indices = @transform_1, window_bounds = array<i64: 128, 128>}, {transform_indices = @transform_2, window_bounds = array<i64: 208, 128>}]} {
    %c0 = arith.constant 0 : index
    %c0_0 = arith.constant 0 : index
    %0 = vector.load %arg1[%c0, %c0_0] : memref<208x128xf32, #tpu.memory_space<vmem>>, vector<208x128xf32>
    %1 = arith.truncf %0 : vector<208x128xf32> to vector<208x128xbf16>
    %c0_1 = arith.constant 0 : index
    %c0_2 = arith.constant 0 : index
    %2 = vector.load %arg2[%c0_1, %c0_2] : memref<128x128xbf16, #tpu.memory_space<vmem>>, vector<128x128xbf16>
    %cst = arith.constant dense<0.000000e+00> : vector<208x128xf32>
    %3 = tpu.matmul %1, %2, %cst {dimension_numbers = #tpu.dot_dimension_numbers<[1], [1], [0], [0], [0, 0, 1, 0], [], []>} : vector<208x128xbf16>, vector<128x128xbf16>, vector<208x128xf32> -> vector<208x128xf32>
    %c0_3 = arith.constant 0 : index
    %c0_4 = arith.constant 0 : index
    %4 = vector.load %arg3[%c0_3, %c0_4] : memref<208x128xf32, #tpu.memory_space<vmem>>, vector<208x128xf32>
    tpu.vector_store %arg3[%c0_3, %c0_4], %3 {strides = array<i32>} : memref<208x128xf32, #tpu.memory_space<vmem>>, vector<208x128xf32>,
    return
  }
  func.func @transform_0(%arg0: i32) -> (i32, i32) {
    %c0_i32 = arith.constant 0 : i32
    %c0_i32_0 = arith.constant 0 : i32
    return %arg0, %c0_i32 : i32, i32
  }
  func.func @transform_1(%arg0: i32) -> (i32, i32) {
    %c0_i32 = arith.constant 0 : i32
    %c0_i32_0 = arith.constant 0 : i32
    %c0_i32_1 = arith.constant 0 : i32
    return %c0_i32, %c0_i32_0 : i32, i32
  }
  func.func @transform_2(%arg0: i32) -> (i32, i32) {
    %c0_i32 = arith.constant 0 : i32
    %c0_i32_0 = arith.constant 0 : i32
    return %arg0, %c0_i32 : i32, i32
  }
}

module attributes {stable_mosaic.version = 11 : i64} {
  func.func @kernel(%arg0: i32, %arg1: memref<208x128xf32, #tpu.memory_space<vmem>>, %arg2: memref<128x128xbf16, #tpu.memory_space<vmem>>, %arg3: memref<208x128xf32, #tpu.memory_space<vmem>>) attributes {dimension_semantics = [#tpu.dimension_semantics<parallel>], iteration_bounds = array<i64: 1>, scalar_prefetch = 0 : i64, scratch_operands = 0 : i64, tpu.core_type = #tpu.core_type<tc>, window_params = [{transform_indices = @transform_0, window_bounds = array<i64: 208, 128>}, {pipeline_mode = #tpu.pipeline_mode<synchronous>, transform_indices = @transform_1, window_bounds = array<i64: 128, 128>}, {transform_indices = @transform_2, window_bounds = array<i64: 208, 128>}]} {
    %c0 = arith.constant 0 : index
    %c0_0 = arith.constant 0 : index
    %0 = vector.load %arg1[%c0, %c0_0] : memref<208x128xf32, #tpu.memory_space<vmem>>, vector<208x128xf32>
    %1 = arith.truncf %0 : vector<208x128xf32> to vector<208x128xbf16>
    %c0_1 = arith.constant 0 : index
    %c0_2 = arith.constant 0 : index
    %2 = vector.load %arg2[%c0_1, %c0_2] : memref<128x128xbf16, #tpu.memory_space<vmem>>, vector<128x128xbf16>
    %cst = arith.constant dense<0.000000e+00> : vector<208x128xf32>
    %3 = tpu.matmul %1, %2, %cst {dimension_numbers = #tpu.dot_dimension_numbers<[1], [1], [0], [0], [0, 0, 1, 0], [], []>} : vector<208x128xbf16>, vector<128x128xbf16>, vector<208x128xf32> -> vector<208x128xf32>
    %c0_3 = arith.constant 0 : index
    %c0_4 = arith.constant 0 : index
    %4 = vector.load %arg3[%c0_3, %c0_4] : memref<208x128xf32, #tpu.memory_space<vmem>>, vector<208x128xf32>
    tpu.vector_store %arg3[%c0_3, %c0_4], %3 {strides = array<i32>} : memref<208x128xf32, #tpu.memory_space<vmem>>, vector<208x128xf32>,
    return
  }
  func.func @transform_0(%arg0: i32) -> (i32, i32) {
    %c0_i32 = arith.constant 0 : i32
    %c0_i32_0 = arith.constant 0 : i32
    return %arg0, %c0_i32 : i32, i32
  }
  func.func @transform_1(%arg0: i32) -> (i32, i32) {
    %c0_i32 = arith.constant 0 : i32
    %c0_i32_0 = arith.constant 0 : i32
    %c0_i32_1 = arith.constant 0 : i32
    return %c0_i32, %c0_i32_0 : i32, i32
  }
  func.func @transform_2(%arg0: i32) -> (i32, i32) {
    %c0_i32 = arith.constant 0 : i32
    %c0_i32_0 = arith.constant 0 : i32
    return %arg0, %c0_i32 : i32, i32
  }
}

</mosaic_0001>

<bundles_post_ra>
// kernel: tpu_custom_call.1
= control target key start
LH: loop header
LB: loop body
LE: loop exit
PB: predicated region body
PF: predicated region fallthrough
CT: control target
= control target key end

     0   :  { %7 = vsyncpa [#allocation3], 0  ;;  %s635_s0 = inlined_call_operand.hbm [shape: f32[200,128], index: 0, kind: input, shape index: {}]   ;;  %s636_s1 = inlined_call_operand.hbm [shape: bf16[128,128], index: 1, kind: input, shape index: {}]   ;;  %s637_s2 = inlined_call_operand.hbm [shape: f32[200,128], index: 2, kind: output, shape index: {}]  }
   0x1   :  { %8 = vsyncpa [#allocation6], 0 }
   0x2   :  { %9 = vsyncpa [#allocation4], 0 }
   0x3   :  { %14 = vsyncadd [#allocation3], 128  ;;  %s527_s9 = smov [#allocation2]   ;;  %s455_s13 = scalar_lea.hbm %s635_s0, 3200 }
   0x4   :  { %s15_s10 = sshll.u32 %s527_s9, 4  ;;  %p456_p0 = scmp.ne.s32.totalorder %s635_s0, %s455_s13  ;;  %s16_s10 = int_to_ptr.vmem [resolvable:$true] %s15_s10 }
   0x5   :  { %p459_p1 = scmp.lt.u32.totalorder %s455_s13, %s635_s0 }
   0x7   :  { %p461_p2 = pnand %p459_p1, %p456_p0 }
   0x9   :  { %464 = shalt.err (!%p461_p2)
}
   0xa   :  { %s465_s18 = scalar_lea.vmem %s16_s10, 3200  ;;  %s469_s19 = scalar_lea.vmem %s16_s10, 3328 }
   0xb   :  { %p466_p3 = scmp.ne.s32.totalorder %s16_s10, %s465_s18  ;;  %p470_p4 = scmp.lt.s32.totalorder %s16_s10, %s16_s10 }
   0xc   :  { %p471_p5 = scmp.lt.s32.totalorder %s469_s19, %s465_s18 }
   0xe   :  { %p472_p6 = por %p471_p5, %p470_p4 }
  0x10   :  { %p473_p7 = pnand %p472_p6, %p466_p3 }
  0x12   :  { %476 = shalt.err (!%p473_p7)
}
  0x13   :  { %s528_s20 = smov 128   ;;  %s529_s21 = smov 8  }
  0x14   :  { %21 = dma.hbm_to_vmem [thread:$0]  %s635_s0, 3200, %s16_s10, [#allocation3], %s528_s20, %s528_s20, %s529_s21  }
  0x15   :  { %s530_s24 = smov [#allocation5]   ;;  %s477_s28 = scalar_lea.hbm %s636_s1, 1024 }
  0x16   :  { %s27_s25 = sshll.u32 %s530_s24, 4  ;;  %p478_p8 = scmp.ne.s32.totalorder %s636_s1, %s477_s28  ;;  %s28_s25 = int_to_ptr.vmem [resolvable:$true] %s27_s25 }
  0x17   :  { %p481_p9 = scmp.lt.u32.totalorder %s477_s28, %s636_s1 }
  0x19   :  { %p483_p10 = pnand %p481_p9, %p478_p8 }
  0x1b   :  { %486 = shalt.err (!%p483_p10)
}
  0x1c   :  { %s487_s5 = scalar_lea.vmem %s28_s25, 1024  ;;  %p492_p12 = scmp.lt.s32.totalorder %s28_s25, %s28_s25 }
  0x1d   :  { %p488_p11 = scmp.ne.s32.totalorder %s28_s25, %s487_s5  ;;  %p493_p13 = scmp.lt.s32.totalorder %s487_s5, %s487_s5 }
  0x1f   :  { %p494_p0 = por %p493_p13, %p492_p12 }
  0x21   :  { %p495_p1 = pnand %p494_p0, %p488_p11 }
  0x23   :  { %498 = shalt.err (!%p495_p1)
}
  0x24   :  { %s531_s0 = smov 64   ;;  %s532_s6 = smov 4  }
  0x25   :  { %33 = dma.hbm_to_vmem [thread:$0]  %s636_s1, 1024, %s28_s25, [#allocation6], %s531_s0, %s531_s0, %s532_s6  }
  0x26   :  { %521 = dma.done.wait [#allocation3], 3328  }
  0x27   :  { %522 = vsyncadd [#allocation3], 4294963968 }
  0x28   :  { %523 = dma.done.wait [#allocation6], 1024  }
  0x29   :  { %524 = vsyncadd [#allocation6], 4294966272  ;;  %v533_v0 = vmov 0.0   ;;  %vm534_vm0 = vmmov 0   ;;  %v447_v1 = vld [vmem:[#allocation5] sm:$0xff]   ;;  %v448_v2 = vld [vmem:[#allocation5 + $0x8] sm:$0xff]  }
  0x2a   :  { %354 = vmatprep.subr.bf16.mxu0 %v533_v0  ;;  %422 = vmatprep.subr.bf16.mxu1 %v533_v0  ;;  %v449_v3 = vld [vmem:[#allocation5 + $0x10] sm:$0xff]   ;;  %v450_v4 = vld [vmem:[#allocation5 + $0x18] sm:$0xff]   ;;  %v451_v5 = vld [vmem:[#allocation5 + $0x20] sm:$0xff]  }
  0x2b   :  { %370 = vmatprep.mubr.msk.bf16.mxu0 %vm534_vm0, %v533_v0  ;;  %398 = vmatprep.mubr.msk.bf16.mxu1 %vm534_vm0, %v533_v0  ;;  %v452_v6 = vld [vmem:[#allocation5 + $0x28] sm:$0xff]   ;;  %v453_v7 = vld [vmem:[#allocation5 + $0x30] sm:$0xff]   ;;  %v454_v8 = vld [vmem:[#allocation5 + $0x38] sm:$0xff]  }
  0x2c   :  { %355 = vmatpush3.bf16.xpose.msra.mxu0 %v447_v1  ;;  %430 = vmatpush3.bf16.xpose.msra.mxu1 %v447_v1  ;;  %v41_v9 = vld [vmem:[#allocation2] sm:$0xff]  ;;  %v42_v10 = vld [vmem:[#allocation2 + $0x8] sm:$0xff]  ;;  %v55_v11 = vld [vmem:[#allocation2 + $0x70] sm:$0xff] }
  0x2d   :  { %356 = vmatprep.subr.bf16.mxu0 %v533_v0  ;;  %423 = vmatprep.subr.bf16.mxu1 %v533_v0  ;;  %v56_v12 = vld [vmem:[#allocation2 + $0x78] sm:$0xff]  ;;  %v67_v13 = vpack.c.bf16 %v42_v10, %v41_v9  ;;  %v43_v15 = vld [vmem:[#allocation2 + $0x10] sm:$0xff]  ;;  %v57_v17 = vld [vmem:[#allocation2 + $0x80] sm:$0xff] }
  0x2e   :  { %v74_v14 = vpack.c.bf16 %v56_v12, %v55_v11  ;;  %v44_v16 = vld [vmem:[#allocation2 + $0x18] sm:$0xff]  ;;  %v58_v18 = vld [vmem:[#allocation2 + $0x88] sm:$0xff]  ;;  %v45_v21 = vld [vmem:[#allocation2 + $0x20] sm:$0xff] }
  0x2f   :  { %v68_v19 = vpack.c.bf16 %v44_v16, %v43_v15  ;;  %v75_v20 = vpack.c.bf16 %v58_v18, %v57_v17  ;;  %v46_v22 = vld [vmem:[#allocation2 + $0x28] sm:$0xff]  ;;  %v59_v23 = vld [vmem:[#allocation2 + $0x90] sm:$0xff]  ;;  %v60_v24 = vld [vmem:[#allocation2 + $0x98] sm:$0xff] }
  0x30   :  { %v69_v25 = vpack.c.bf16 %v46_v22, %v45_v21  ;;  %v76_v26 = vpack.c.bf16 %v60_v24, %v59_v23  ;;  %v47_v27 = vld [vmem:[#allocation2 + $0x30] sm:$0xff]  ;;  %v48_v28 = vld [vmem:[#allocation2 + $0x38] sm:$0xff]  ;;  %v61_v29 = vld [vmem:[#allocation2 + $0xa0] sm:$0xff] }
  0x31   :  { %v62_v30 = vld [vmem:[#allocation2 + $0xa8] sm:$0xff]  ;;  %v70_v31 = vpack.c.bf16 %v48_v28, %v47_v27  ;;  %v49_v33 = vld [vmem:[#allocation2 + $0x40] sm:$0xff]  ;;  %v63_v35 = vld [vmem:[#allocation2 + $0xb0] sm:$0xff] }
  0x32   :  { %v77_v32 = vpack.c.bf16 %v62_v30, %v61_v29  ;;  %v50_v34 = vld [vmem:[#allocation2 + $0x48] sm:$0xff]  ;;  %v64_v36 = vld [vmem:[#allocation2 + $0xb8] sm:$0xff]  ;;  %v51_v39 = vld [vmem:[#allocation2 + $0x50] sm:$0xff] }
  0x33   :  { %v71_v37 = vpack.c.bf16 %v50_v34, %v49_v33  ;;  %v78_v38 = vpack.c.bf16 %v64_v36, %v63_v35  ;;  %v52_v40 = vld [vmem:[#allocation2 + $0x58] sm:$0xff]  ;;  %v65_v41 = vld [vmem:[#allocation2 + $0xc0] sm:$0xff]  ;;  %v66_v42 = vld [vmem:[#allocation2 + $0xc8] sm:$0xff] }
  0x34   :  { %357 = vmatpush3.bf16.xpose.msra.mxu0 %v448_v2  ;;  %431 = vmatpush3.bf16.xpose.msra.mxu1 %v448_v2  ;;  %v72_v43 = vpack.c.bf16 %v52_v40, %v51_v39  ;;  %v79_v44 = vpack.c.bf16 %v66_v42, %v65_v41  ;;  %v53_v45 = vld [vmem:[#allocation2 + $0x60] sm:$0xff]  ;;  %v54_v46 = vld [vmem:[#allocation2 + $0x68] sm:$0xff] }
  0x35   :  { %358 = vmatprep.subr.bf16.mxu0 %v533_v0  ;;  %424 = vmatprep.subr.bf16.mxu1 %v533_v0  ;;  %v73_v47 = vpack.c.bf16 %v54_v46, %v53_v45 }
  0x3c   :  { %359 = vmatpush3.bf16.xpose.msra.mxu0 %v449_v3  ;;  %432 = vmatpush3.bf16.xpose.msra.mxu1 %v449_v3 }
  0x3d   :  { %360 = vmatprep.subr.bf16.mxu0 %v533_v0  ;;  %425 = vmatprep.subr.bf16.mxu1 %v533_v0 }
  0x44   :  { %361 = vmatpush3.bf16.xpose.msra.mxu0 %v450_v4  ;;  %433 = vmatpush3.bf16.xpose.msra.mxu1 %v450_v4 }
  0x45   :  { %362 = vmatprep.subr.bf16.mxu0 %v533_v0  ;;  %426 = vmatprep.subr.bf16.mxu1 %v533_v0 }
  0x4c   :  { %363 = vmatpush3.bf16.xpose.msra.mxu0 %v451_v5  ;;  %434 = vmatpush3.bf16.xpose.msra.mxu1 %v451_v5 }
  0x4d   :  { %364 = vmatprep.subr.bf16.mxu0 %v533_v0  ;;  %427 = vmatprep.subr.bf16.mxu1 %v533_v0 }
  0x54   :  { %365 = vmatpush3.bf16.xpose.msra.mxu0 %v452_v6  ;;  %435 = vmatpush3.bf16.xpose.msra.mxu1 %v452_v6 }
  0x55   :  { %366 = vmatprep.subr.bf16.mxu0 %v533_v0  ;;  %428 = vmatprep.subr.bf16.mxu1 %v533_v0 }
  0x5c   :  { %367 = vmatpush3.bf16.xpose.msra.mxu0 %v453_v7  ;;  %436 = vmatpush3.bf16.xpose.msra.mxu1 %v453_v7 }
  0x5d   :  { %368 = vmatprep.subr.bf16.mxu0 %v533_v0  ;;  %429 = vmatprep.subr.bf16.mxu1 %v533_v0 }
  0x64   :  { %369 = vmatpush3.bf16.xpose.msra.mxu0 %v454_v8  ;;  %437 = vmatpush3.bf16.xpose.msra.mxu1 %v454_v8 }
  0x6b   :  { %371 = vmatmul.mubr.bf16.vlgmr.msra.gmra.mrb[0].mxu0 %v67_v13  ;;  %399 = vmatmul.mubr.bf16.vlgmr.msra.gmra.mrb[0].mxu1 %v74_v14 }
  0x6c   :  { %374 = vmatprep.mubr.msk.bf16.mxu0 %vm534_vm0, %v533_v0  ;;  %402 = vmatprep.mubr.msk.bf16.mxu1 %vm534_vm0, %v533_v0 }
  0x73   :  { %375 = vmatmul.mubr.bf16.gmra.mrb[4].mxu0 %v68_v19  ;;  %403 = vmatmul.mubr.bf16.gmra.mrb[4].mxu1 %v75_v20 }
  0x74   :  { %378 = vmatprep.mubr.msk.bf16.mxu0 %vm534_vm0, %v533_v0  ;;  %406 = vmatprep.mubr.msk.bf16.mxu1 %vm534_vm0, %v533_v0 }
  0x7b   :  { %379 = vmatmul.mubr.bf16.gmra.mrb[8].mxu0 %v69_v25  ;;  %407 = vmatmul.mubr.bf16.gmra.mrb[8].mxu1 %v76_v26 }
  0x7c   :  { %382 = vmatprep.mubr.msk.bf16.mxu0 %vm534_vm0, %v533_v0  ;;  %410 = vmatprep.mubr.msk.bf16.mxu1 %vm534_vm0, %v533_v0 }
  0x83   :  { %383 = vmatmul.mubr.bf16.gmra.mrb[12].mxu0 %v70_v31  ;;  %411 = vmatmul.mubr.bf16.gmra.mrb[12].mxu1 %v77_v32 }
  0x84   :  { %386 = vmatprep.mubr.msk.bf16.mxu0 %vm534_vm0, %v533_v0  ;;  %414 = vmatprep.mubr.msk.bf16.mxu1 %vm534_vm0, %v533_v0 }
  0x8b   :  { %387 = vmatmul.mubr.bf16.gmra.mrb[16].mxu0 %v71_v37  ;;  %415 = vmatmul.mubr.bf16.gmra.mrb[16].mxu1 %v78_v38 }
  0x8c   :  { %390 = vmatprep.mubr.msk.bf16.mxu0 %vm534_vm0, %v533_v0  ;;  %418 = vmatprep.mubr.msk.bf16.mxu1 %vm534_vm0, %v533_v0 }
  0x93   :  { %391 = vmatmul.mubr.bf16.gmra.mrb[20].mxu0 %v72_v43  ;;  %419 = vmatmul.mubr.bf16.gmra.mrb[20].mxu1 %v79_v44 }
  0x94   :  { %394 = vmatprep.mubr.msk.bf16.mxu0 %vm534_vm0, %v533_v0 }
  0x9b   :  { %395 = vmatmul.mubr.bf16.gmra.mrb[24].mxu0 %v73_v47 }
 0x13e   :  { %v178_v48 = vpop.f32.mrb[0].mxu0  ;;  %v234_v49 = vpop.f32.mrb[0].mxu1 }
 0x13f   :  { %281 = vst [vmem:[#allocation7] sm:$0xff] %v178_v48  ;;  %v372_v50 = vpop.f32.mrb[1].mxu0  ;;  %295 = vst [vmem:[#allocation7 + $0x70] sm:$0xff] %v234_v49  ;;  %v400_v51 = vpop.f32.mrb[1].mxu1 }
 0x140   :  { %v181_v52 = vpop.f32.mrb[2].mxu0  ;;  %v237_v53 = vpop.f32.mrb[2].mxu1 }
 0x141   :  { %282 = vst [vmem:[#allocation7 + $0x8] sm:$0xff] %v181_v52  ;;  %v373_v54 = vpop.f32.mrb[3].mxu0  ;;  %296 = vst [vmem:[#allocation7 + $0x78] sm:$0xff] %v237_v53  ;;  %v401_v55 = vpop.f32.mrb[3].mxu1 }
 0x146   :  { %v186_v56 = vpop.f32.mrb[4].mxu0  ;;  %v242_v57 = vpop.f32.mrb[4].mxu1 }
 0x147   :  { %283 = vst [vmem:[#allocation7 + $0x10] sm:$0xff] %v186_v56  ;;  %v376_v58 = vpop.f32.mrb[5].mxu0  ;;  %297 = vst [vmem:[#allocation7 + $0x80] sm:$0xff] %v242_v57  ;;  %v404_v59 = vpop.f32.mrb[5].mxu1 }
 0x148   :  { %v189_v60 = vpop.f32.mrb[6].mxu0  ;;  %v245_v61 = vpop.f32.mrb[6].mxu1 }
 0x149   :  { %284 = vst [vmem:[#allocation7 + $0x18] sm:$0xff] %v189_v60  ;;  %v377_v62 = vpop.f32.mrb[7].mxu0  ;;  %298 = vst [vmem:[#allocation7 + $0x88] sm:$0xff] %v245_v61  ;;  %v405_v63 = vpop.f32.mrb[7].mxu1 }
 0x14e   :  { %v194_v0 = vpop.f32.mrb[8].mxu0  ;;  %v250_v1 = vpop.f32.mrb[8].mxu1 }
 0x14f   :  { %285 = vst [vmem:[#allocation7 + $0x20] sm:$0xff] %v194_v0  ;;  %v380_v2 = vpop.f32.mrb[9].mxu0  ;;  %299 = vst [vmem:[#allocation7 + $0x90] sm:$0xff] %v250_v1  ;;  %v408_v3 = vpop.f32.mrb[9].mxu1 }
 0x150   :  { %v197_v4 = vpop.f32.mrb[10].mxu0  ;;  %v253_v5 = vpop.f32.mrb[10].mxu1 }
 0x151   :  { %286 = vst [vmem:[#allocation7 + $0x28] sm:$0xff] %v197_v4  ;;  %v381_v6 = vpop.f32.mrb[11].mxu0  ;;  %300 = vst [vmem:[#allocation7 + $0x98] sm:$0xff] %v253_v5  ;;  %v409_v7 = vpop.f32.mrb[11].mxu1 }
 0x156   :  { %v202_v8 = vpop.f32.mrb[12].mxu0  ;;  %v258_v9 = vpop.f32.mrb[12].mxu1 }
 0x157   :  { %287 = vst [vmem:[#allocation7 + $0x30] sm:$0xff] %v202_v8  ;;  %v384_v10 = vpop.f32.mrb[13].mxu0  ;;  %301 = vst [vmem:[#allocation7 + $0xa0] sm:$0xff] %v258_v9  ;;  %v412_v11 = vpop.f32.mrb[13].mxu1 }
 0x158   :  { %v205_v12 = vpop.f32.mrb[14].mxu0  ;;  %v261_v13 = vpop.f32.mrb[14].mxu1 }
 0x159   :  { %288 = vst [vmem:[#allocation7 + $0x38] sm:$0xff] %v205_v12  ;;  %v385_v14 = vpop.f32.mrb[15].mxu0  ;;  %302 = vst [vmem:[#allocation7 + $0xa8] sm:$0xff] %v261_v13  ;;  %v413_v15 = vpop.f32.mrb[15].mxu1 }
 0x15e   :  { %v210_v16 = vpop.f32.mrb[16].mxu0  ;;  %v266_v17 = vpop.f32.mrb[16].mxu1 }
 0x15f   :  { %289 = vst [vmem:[#allocation7 + $0x40] sm:$0xff] %v210_v16  ;;  %v388_v18 = vpop.f32.mrb[17].mxu0  ;;  %303 = vst [vmem:[#allocation7 + $0xb0] sm:$0xff] %v266_v17  ;;  %v416_v19 = vpop.f32.mrb[17].mxu1 }
 0x160   :  { %v213_v20 = vpop.f32.mrb[18].mxu0  ;;  %v269_v21 = vpop.f32.mrb[18].mxu1 }
 0x161   :  { %290 = vst [vmem:[#allocation7 + $0x48] sm:$0xff] %v213_v20  ;;  %v389_v22 = vpop.f32.mrb[19].mxu0  ;;  %304 = vst [vmem:[#allocation7 + $0xb8] sm:$0xff] %v269_v21  ;;  %v417_v23 = vpop.f32.mrb[19].mxu1 }
 0x166   :  { %v218_v24 = vpop.f32.mrb[20].mxu0  ;;  %v274_v25 = vpop.f32.mrb[20].mxu1 }
 0x167   :  { %291 = vst [vmem:[#allocation7 + $0x50] sm:$0xff] %v218_v24  ;;  %v392_v26 = vpop.f32.mrb[21].mxu0  ;;  %305 = vst [vmem:[#allocation7 + $0xc0] sm:$0xff] %v274_v25  ;;  %v420_v27 = vpop.f32.mrb[21].mxu1 }
 0x168   :  { %v221_v28 = vpop.f32.mrb[22].mxu0  ;;  %v277_v29 = vpop.f32.mrb[22].mxu1 }
 0x169   :  { %292 = vst [vmem:[#allocation7 + $0x58] sm:$0xff] %v221_v28  ;;  %v393_v30 = vpop.f32.mrb[23].mxu0  ;;  %306 = vst [vmem:[#allocation7 + $0xc8] sm:$0xff] %v277_v29  ;;  %v421_v31 = vpop.f32.mrb[23].mxu1 }
 0x16e   :  { %v226_v32 = vpop.f32.mrb[24].mxu0 }
 0x16f   :  { %293 = vst [vmem:[#allocation7 + $0x60] sm:$0xff] %v226_v32  ;;  %v396_v33 = vpop.f32.mrb[25].mxu0 }
 0x170   :  { %v229_v34 = vpop.f32.mrb[26].mxu0 }
 0x171   :  { %294 = vst [vmem:[#allocation7 + $0x68] sm:$0xff] %v229_v34  ;;  %v397_v35 = vpop.f32.mrb[27].mxu0 }
 0x172   :  { %311 = vsyncadd [#allocation4], 128  ;;  %s535_s1 = smov [#allocation7]  }
 0x173   :  { %s312_s9 = sshll.u32 %s535_s1, 4  ;;  %s313_s9 = int_to_ptr.vmem [resolvable:$true] %s312_s9 }
 0x174   :  { %s499_s10 = scalar_lea.vmem %s313_s9, 3200  ;;  %s503_s11 = scalar_lea.vmem %s313_s9, 3328 }
 0x175   :  { %p500_p2 = scmp.ne.s32.totalorder %s313_s9, %s499_s10  ;;  %p504_p3 = scmp.lt.s32.totalorder %s313_s9, %s313_s9 }
 0x176   :  { %p505_p4 = scmp.lt.s32.totalorder %s503_s11, %s499_s10 }
 0x178   :  { %p506_p5 = por %p505_p4, %p504_p3 }
 0x17a   :  { %p507_p6 = pnand %p506_p5, %p500_p2 }
 0x17c   :  { %510 = shalt.err (!%p507_p6)
}
 0x17d   :  { %s511_s14 = scalar_lea.hbm %s637_s2, 3200 }
 0x17e   :  { %p512_p7 = scmp.ne.s32.totalorder %s637_s2, %s511_s14  ;;  %p515_p8 = scmp.lt.u32.totalorder %s511_s14, %s637_s2 }
 0x180   :  { %p517_p9 = pnand %p515_p8, %p512_p7 }
 0x182   :  { %520 = shalt.err (!%p517_p9)
}
 0x183   :  { %318 = dma.vmem_to_hbm [thread:$0]  %s313_s9, 3200, %s637_s2, [#allocation4], %s528_s20, %s528_s20, %s529_s21  }
 0x184   :  { %525 = dma.done.wait [#allocation4], 3328  }
 0x185   :  { %526 = vsyncadd [#allocation4], 4294963968 }
 0x186   :  { %322 = vsyncpa [#allocation3], 1 }
 0x187   :  { %323 = vsyncpa [#allocation6], 1 }
 0x188   :  { %324 = vsyncpa [#allocation4], 1 }

// kernel: tpu_custom_call.1
= control target key start
LH: loop header
LB: loop body
LE: loop exit
PB: predicated region body
PF: predicated region fallthrough
CT: control target
= control target key end

     0   :  { %7 = vsyncpa [#allocation3], 0  ;;  %s635_s0 = inlined_call_operand.hbm [shape: f32[200,128], index: 0, kind: input, shape index: {}]   ;;  %s636_s1 = inlined_call_operand.hbm [shape: bf16[128,128], index: 1, kind: input, shape index: {}]   ;;  %s637_s2 = inlined_call_operand.hbm [shape: f32[200,128], index: 2, kind: output, shape index: {}]  }
   0x1   :  { %8 = vsyncpa [#allocation6], 0 }
   0x2   :  { %9 = vsyncpa [#allocation4], 0 }
   0x3   :  { %14 = vsyncadd [#allocation3], 128  ;;  %s527_s9 = smov [#allocation2]   ;;  %s455_s13 = scalar_lea.hbm %s635_s0, 3200 }
   0x4   :  { %s15_s10 = sshll.u32 %s527_s9, 4  ;;  %p456_p0 = scmp.ne.s32.totalorder %s635_s0, %s455_s13  ;;  %s16_s10 = int_to_ptr.vmem [resolvable:$true] %s15_s10 }
   0x5   :  { %p459_p1 = scmp.lt.u32.totalorder %s455_s13, %s635_s0 }
   0x7   :  { %p461_p2 = pnand %p459_p1, %p456_p0 }
   0x9   :  { %464 = shalt.err (!%p461_p2)
}
   0xa   :  { %s465_s18 = scalar_lea.vmem %s16_s10, 3200  ;;  %s469_s19 = scalar_lea.vmem %s16_s10, 3328 }
   0xb   :  { %p466_p3 = scmp.ne.s32.totalorder %s16_s10, %s465_s18  ;;  %p470_p4 = scmp.lt.s32.totalorder %s16_s10, %s16_s10 }
   0xc   :  { %p471_p5 = scmp.lt.s32.totalorder %s469_s19, %s465_s18 }
   0xe   :  { %p472_p6 = por %p471_p5, %p470_p4 }
  0x10   :  { %p473_p7 = pnand %p472_p6, %p466_p3 }
  0x12   :  { %476 = shalt.err (!%p473_p7)
}
  0x13   :  { %s528_s20 = smov 128   ;;  %s529_s21 = smov 8  }
  0x14   :  { %21 = dma.hbm_to_vmem [thread:$0]  %s635_s0, 3200, %s16_s10, [#allocation3], %s528_s20, %s528_s20, %s529_s21  }
  0x15   :  { %s530_s24 = smov [#allocation5]   ;;  %s477_s28 = scalar_lea.hbm %s636_s1, 1024 }
  0x16   :  { %s27_s25 = sshll.u32 %s530_s24, 4  ;;  %p478_p8 = scmp.ne.s32.totalorder %s636_s1, %s477_s28  ;;  %s28_s25 = int_to_ptr.vmem [resolvable:$true] %s27_s25 }
  0x17   :  { %p481_p9 = scmp.lt.u32.totalorder %s477_s28, %s636_s1 }
  0x19   :  { %p483_p10 = pnand %p481_p9, %p478_p8 }
  0x1b   :  { %486 = shalt.err (!%p483_p10)
}
  0x1c   :  { %s487_s5 = scalar_lea.vmem %s28_s25, 1024  ;;  %p492_p12 = scmp.lt.s32.totalorder %s28_s25, %s28_s25 }
  0x1d   :  { %p488_p11 = scmp.ne.s32.totalorder %s28_s25, %s487_s5  ;;  %p493_p13 = scmp.lt.s32.totalorder %s487_s5, %s487_s5 }
  0x1f   :  { %p494_p0 = por %p493_p13, %p492_p12 }
  0x21   :  { %p495_p1 = pnand %p494_p0, %p488_p11 }
  0x23   :  { %498 = shalt.err (!%p495_p1)
}
  0x24   :  { %s531_s0 = smov 64   ;;  %s532_s6 = smov 4  }
  0x25   :  { %33 = dma.hbm_to_vmem [thread:$0]  %s636_s1, 1024, %s28_s25, [#allocation6], %s531_s0, %s531_s0, %s532_s6  }
  0x26   :  { %521 = dma.done.wait [#allocation3], 3328  }
  0x27   :  { %522 = vsyncadd [#allocation3], 4294963968 }
  0x28   :  { %523 = dma.done.wait [#allocation6], 1024  }
  0x29   :  { %524 = vsyncadd [#allocation6], 4294966272  ;;  %v533_v0 = vmov 0.0   ;;  %vm534_vm0 = vmmov 0   ;;  %v447_v1 = vld [vmem:[#allocation5] sm:$0xff]   ;;  %v448_v2 = vld [vmem:[#allocation5 + $0x8] sm:$0xff]  }
  0x2a   :  { %354 = vmatprep.subr.bf16.mxu0 %v533_v0  ;;  %422 = vmatprep.subr.bf16.mxu1 %v533_v0  ;;  %v449_v3 = vld [vmem:[#allocation5 + $0x10] sm:$0xff]   ;;  %v450_v4 = vld [vmem:[#allocation5 + $0x18] sm:$0xff]   ;;  %v451_v5 = vld [vmem:[#allocation5 + $0x20] sm:$0xff]  }
  0x2b   :  { %370 = vmatprep.mubr.msk.bf16.mxu0 %vm534_vm0, %v533_v0  ;;  %398 = vmatprep.mubr.msk.bf16.mxu1 %vm534_vm0, %v533_v0  ;;  %v452_v6 = vld [vmem:[#allocation5 + $0x28] sm:$0xff]   ;;  %v453_v7 = vld [vmem:[#allocation5 + $0x30] sm:$0xff]   ;;  %v454_v8 = vld [vmem:[#allocation5 + $0x38] sm:$0xff]  }
  0x2c   :  { %355 = vmatpush3.bf16.xpose.msra.mxu0 %v447_v1  ;;  %430 = vmatpush3.bf16.xpose.msra.mxu1 %v447_v1  ;;  %v41_v9 = vld [vmem:[#allocation2] sm:$0xff]  ;;  %v42_v10 = vld [vmem:[#allocation2 + $0x8] sm:$0xff]  ;;  %v55_v11 = vld [vmem:[#allocation2 + $0x70] sm:$0xff] }
  0x2d   :  { %356 = vmatprep.subr.bf16.mxu0 %v533_v0  ;;  %423 = vmatprep.subr.bf16.mxu1 %v533_v0  ;;  %v56_v12 = vld [vmem:[#allocation2 + $0x78] sm:$0xff]  ;;  %v67_v13 = vpack.c.bf16 %v42_v10, %v41_v9  ;;  %v43_v15 = vld [vmem:[#allocation2 + $0x10] sm:$0xff]  ;;  %v57_v17 = vld [vmem:[#allocation2 + $0x80] sm:$0xff] }
  0x2e   :  { %v74_v14 = vpack.c.bf16 %v56_v12, %v55_v11  ;;  %v44_v16 = vld [vmem:[#allocation2 + $0x18] sm:$0xff]  ;;  %v58_v18 = vld [vmem:[#allocation2 + $0x88] sm:$0xff]  ;;  %v45_v21 = vld [vmem:[#allocation2 + $0x20] sm:$0xff] }
  0x2f   :  { %v68_v19 = vpack.c.bf16 %v44_v16, %v43_v15  ;;  %v75_v20 = vpack.c.bf16 %v58_v18, %v57_v17  ;;  %v46_v22 = vld [vmem:[#allocation2 + $0x28] sm:$0xff]  ;;  %v59_v23 = vld [vmem:[#allocation2 + $0x90] sm:$0xff]  ;;  %v60_v24 = vld [vmem:[#allocation2 + $0x98] sm:$0xff] }
  0x30   :  { %v69_v25 = vpack.c.bf16 %v46_v22, %v45_v21  ;;  %v76_v26 = vpack.c.bf16 %v60_v24, %v59_v23  ;;  %v47_v27 = vld [vmem:[#allocation2 + $0x30] sm:$0xff]  ;;  %v48_v28 = vld [vmem:[#allocation2 + $0x38] sm:$0xff]  ;;  %v61_v29 = vld [vmem:[#allocation2 + $0xa0] sm:$0xff] }
  0x31   :  { %v62_v30 = vld [vmem:[#allocation2 + $0xa8] sm:$0xff]  ;;  %v70_v31 = vpack.c.bf16 %v48_v28, %v47_v27  ;;  %v49_v33 = vld [vmem:[#allocation2 + $0x40] sm:$0xff]  ;;  %v63_v35 = vld [vmem:[#allocation2 + $0xb0] sm:$0xff] }
  0x32   :  { %v77_v32 = vpack.c.bf16 %v62_v30, %v61_v29  ;;  %v50_v34 = vld [vmem:[#allocation2 + $0x48] sm:$0xff]  ;;  %v64_v36 = vld [vmem:[#allocation2 + $0xb8] sm:$0xff]  ;;  %v51_v39 = vld [vmem:[#allocation2 + $0x50] sm:$0xff] }
  0x33   :  { %v71_v37 = vpack.c.bf16 %v50_v34, %v49_v33  ;;  %v78_v38 = vpack.c.bf16 %v64_v36, %v63_v35  ;;  %v52_v40 = vld [vmem:[#allocation2 + $0x58] sm:$0xff]  ;;  %v65_v41 = vld [vmem:[#allocation2 + $0xc0] sm:$0xff]  ;;  %v66_v42 = vld [vmem:[#allocation2 + $0xc8] sm:$0xff] }
  0x34   :  { %357 = vmatpush3.bf16.xpose.msra.mxu0 %v448_v2  ;;  %431 = vmatpush3.bf16.xpose.msra.mxu1 %v448_v2  ;;  %v72_v43 = vpack.c.bf16 %v52_v40, %v51_v39  ;;  %v79_v44 = vpack.c.bf16 %v66_v42, %v65_v41  ;;  %v53_v45 = vld [vmem:[#allocation2 + $0x60] sm:$0xff]  ;;  %v54_v46 = vld [vmem:[#allocation2 + $0x68] sm:$0xff] }
  0x35   :  { %358 = vmatprep.subr.bf16.mxu0 %v533_v0  ;;  %424 = vmatprep.subr.bf16.mxu1 %v533_v0  ;;  %v73_v47 = vpack.c.bf16 %v54_v46, %v53_v45 }
  0x3c   :  { %359 = vmatpush3.bf16.xpose.msra.mxu0 %v449_v3  ;;  %432 = vmatpush3.bf16.xpose.msra.mxu1 %v449_v3 }
  0x3d   :  { %360 = vmatprep.subr.bf16.mxu0 %v533_v0  ;;  %425 = vmatprep.subr.bf16.mxu1 %v533_v0 }
  0x44   :  { %361 = vmatpush3.bf16.xpose.msra.mxu0 %v450_v4  ;;  %433 = vmatpush3.bf16.xpose.msra.mxu1 %v450_v4 }
  0x45   :  { %362 = vmatprep.subr.bf16.mxu0 %v533_v0  ;;  %426 = vmatprep.subr.bf16.mxu1 %v533_v0 }
  0x4c   :  { %363 = vmatpush3.bf16.xpose.msra.mxu0 %v451_v5  ;;  %434 = vmatpush3.bf16.xpose.msra.mxu1 %v451_v5 }
  0x4d   :  { %364 = vmatprep.subr.bf16.mxu0 %v533_v0  ;;  %427 = vmatprep.subr.bf16.mxu1 %v533_v0 }
  0x54   :  { %365 = vmatpush3.bf16.xpose.msra.mxu0 %v452_v6  ;;  %435 = vmatpush3.bf16.xpose.msra.mxu1 %v452_v6 }
  0x55   :  { %366 = vmatprep.subr.bf16.mxu0 %v533_v0  ;;  %428 = vmatprep.subr.bf16.mxu1 %v533_v0 }
  0x5c   :  { %367 = vmatpush3.bf16.xpose.msra.mxu0 %v453_v7  ;;  %436 = vmatpush3.bf16.xpose.msra.mxu1 %v453_v7 }
  0x5d   :  { %368 = vmatprep.subr.bf16.mxu0 %v533_v0  ;;  %429 = vmatprep.subr.bf16.mxu1 %v533_v0 }
  0x64   :  { %369 = vmatpush3.bf16.xpose.msra.mxu0 %v454_v8  ;;  %437 = vmatpush3.bf16.xpose.msra.mxu1 %v454_v8 }
  0x6b   :  { %371 = vmatmul.mubr.bf16.vlgmr.msra.gmra.mrb[0].mxu0 %v67_v13  ;;  %399 = vmatmul.mubr.bf16.vlgmr.msra.gmra.mrb[0].mxu1 %v74_v14 }
  0x6c   :  { %374 = vmatprep.mubr.msk.bf16.mxu0 %vm534_vm0, %v533_v0  ;;  %402 = vmatprep.mubr.msk.bf16.mxu1 %vm534_vm0, %v533_v0 }
  0x73   :  { %375 = vmatmul.mubr.bf16.gmra.mrb[4].mxu0 %v68_v19  ;;  %403 = vmatmul.mubr.bf16.gmra.mrb[4].mxu1 %v75_v20 }
  0x74   :  { %378 = vmatprep.mubr.msk.bf16.mxu0 %vm534_vm0, %v533_v0  ;;  %406 = vmatprep.mubr.msk.bf16.mxu1 %vm534_vm0, %v533_v0 }
  0x7b   :  { %379 = vmatmul.mubr.bf16.gmra.mrb[8].mxu0 %v69_v25  ;;  %407 = vmatmul.mubr.bf16.gmra.mrb[8].mxu1 %v76_v26 }
  0x7c   :  { %382 = vmatprep.mubr.msk.bf16.mxu0 %vm534_vm0, %v533_v0  ;;  %410 = vmatprep.mubr.msk.bf16.mxu1 %vm534_vm0, %v533_v0 }
  0x83   :  { %383 = vmatmul.mubr.bf16.gmra.mrb[12].mxu0 %v70_v31  ;;  %411 = vmatmul.mubr.bf16.gmra.mrb[12].mxu1 %v77_v32 }
  0x84   :  { %386 = vmatprep.mubr.msk.bf16.mxu0 %vm534_vm0, %v533_v0  ;;  %414 = vmatprep.mubr.msk.bf16.mxu1 %vm534_vm0, %v533_v0 }
  0x8b   :  { %387 = vmatmul.mubr.bf16.gmra.mrb[16].mxu0 %v71_v37  ;;  %415 = vmatmul.mubr.bf16.gmra.mrb[16].mxu1 %v78_v38 }
  0x8c   :  { %390 = vmatprep.mubr.msk.bf16.mxu0 %vm534_vm0, %v533_v0  ;;  %418 = vmatprep.mubr.msk.bf16.mxu1 %vm534_vm0, %v533_v0 }
  0x93   :  { %391 = vmatmul.mubr.bf16.gmra.mrb[20].mxu0 %v72_v43  ;;  %419 = vmatmul.mubr.bf16.gmra.mrb[20].mxu1 %v79_v44 }
  0x94   :  { %394 = vmatprep.mubr.msk.bf16.mxu0 %vm534_vm0, %v533_v0 }
  0x9b   :  { %395 = vmatmul.mubr.bf16.gmra.mrb[24].mxu0 %v73_v47 }
 0x13e   :  { %v178_v48 = vpop.f32.mrb[0].mxu0  ;;  %v234_v49 = vpop.f32.mrb[0].mxu1 }
 0x13f   :  { %281 = vst [vmem:[#allocation7] sm:$0xff] %v178_v48  ;;  %v372_v50 = vpop.f32.mrb[1].mxu0  ;;  %295 = vst [vmem:[#allocation7 + $0x70] sm:$0xff] %v234_v49  ;;  %v400_v51 = vpop.f32.mrb[1].mxu1 }
 0x140   :  { %v181_v52 = vpop.f32.mrb[2].mxu0  ;;  %v237_v53 = vpop.f32.mrb[2].mxu1 }
 0x141   :  { %282 = vst [vmem:[#allocation7 + $0x8] sm:$0xff] %v181_v52  ;;  %v373_v54 = vpop.f32.mrb[3].mxu0  ;;  %296 = vst [vmem:[#allocation7 + $0x78] sm:$0xff] %v237_v53  ;;  %v401_v55 = vpop.f32.mrb[3].mxu1 }
 0x146   :  { %v186_v56 = vpop.f32.mrb[4].mxu0  ;;  %v242_v57 = vpop.f32.mrb[4].mxu1 }
 0x147   :  { %283 = vst [vmem:[#allocation7 + $0x10] sm:$0xff] %v186_v56  ;;  %v376_v58 = vpop.f32.mrb[5].mxu0  ;;  %297 = vst [vmem:[#allocation7 + $0x80] sm:$0xff] %v242_v57  ;;  %v404_v59 = vpop.f32.mrb[5].mxu1 }
 0x148   :  { %v189_v60 = vpop.f32.mrb[6].mxu0  ;;  %v245_v61 = vpop.f32.mrb[6].mxu1 }
 0x149   :  { %284 = vst [vmem:[#allocation7 + $0x18] sm:$0xff] %v189_v60  ;;  %v377_v62 = vpop.f32.mrb[7].mxu0  ;;  %298 = vst [vmem:[#allocation7 + $0x88] sm:$0xff] %v245_v61  ;;  %v405_v63 = vpop.f32.mrb[7].mxu1 }
 0x14e   :  { %v194_v0 = vpop.f32.mrb[8].mxu0  ;;  %v250_v1 = vpop.f32.mrb[8].mxu1 }
 0x14f   :  { %285 = vst [vmem:[#allocation7 + $0x20] sm:$0xff] %v194_v0  ;;  %v380_v2 = vpop.f32.mrb[9].mxu0  ;;  %299 = vst [vmem:[#allocation7 + $0x90] sm:$0xff] %v250_v1  ;;  %v408_v3 = vpop.f32.mrb[9].mxu1 }
 0x150   :  { %v197_v4 = vpop.f32.mrb[10].mxu0  ;;  %v253_v5 = vpop.f32.mrb[10].mxu1 }
 0x151   :  { %286 = vst [vmem:[#allocation7 + $0x28] sm:$0xff] %v197_v4  ;;  %v381_v6 = vpop.f32.mrb[11].mxu0  ;;  %300 = vst [vmem:[#allocation7 + $0x98] sm:$0xff] %v253_v5  ;;  %v409_v7 = vpop.f32.mrb[11].mxu1 }
 0x156   :  { %v202_v8 = vpop.f32.mrb[12].mxu0  ;;  %v258_v9 = vpop.f32.mrb[12].mxu1 }
 0x157   :  { %287 = vst [vmem:[#allocation7 + $0x30] sm:$0xff] %v202_v8  ;;  %v384_v10 = vpop.f32.mrb[13].mxu0  ;;  %301 = vst [vmem:[#allocation7 + $0xa0] sm:$0xff] %v258_v9  ;;  %v412_v11 = vpop.f32.mrb[13].mxu1 }
 0x158   :  { %v205_v12 = vpop.f32.mrb[14].mxu0  ;;  %v261_v13 = vpop.f32.mrb[14].mxu1 }
 0x159   :  { %288 = vst [vmem:[#allocation7 + $0x38] sm:$0xff] %v205_v12  ;;  %v385_v14 = vpop.f32.mrb[15].mxu0  ;;  %302 = vst [vmem:[#allocation7 + $0xa8] sm:$0xff] %v261_v13  ;;  %v413_v15 = vpop.f32.mrb[15].mxu1 }
 0x15e   :  { %v210_v16 = vpop.f32.mrb[16].mxu0  ;;  %v266_v17 = vpop.f32.mrb[16].mxu1 }
 0x15f   :  { %289 = vst [vmem:[#allocation7 + $0x40] sm:$0xff] %v210_v16  ;;  %v388_v18 = vpop.f32.mrb[17].mxu0  ;;  %303 = vst [vmem:[#allocation7 + $0xb0] sm:$0xff] %v266_v17  ;;  %v416_v19 = vpop.f32.mrb[17].mxu1 }
 0x160   :  { %v213_v20 = vpop.f32.mrb[18].mxu0  ;;  %v269_v21 = vpop.f32.mrb[18].mxu1 }
 0x161   :  { %290 = vst [vmem:[#allocation7 + $0x48] sm:$0xff] %v213_v20  ;;  %v389_v22 = vpop.f32.mrb[19].mxu0  ;;  %304 = vst [vmem:[#allocation7 + $0xb8] sm:$0xff] %v269_v21  ;;  %v417_v23 = vpop.f32.mrb[19].mxu1 }
 0x166   :  { %v218_v24 = vpop.f32.mrb[20].mxu0  ;;  %v274_v25 = vpop.f32.mrb[20].mxu1 }
 0x167   :  { %291 = vst [vmem:[#allocation7 + $0x50] sm:$0xff] %v218_v24  ;;  %v392_v26 = vpop.f32.mrb[21].mxu0  ;;  %305 = vst [vmem:[#allocation7 + $0xc0] sm:$0xff] %v274_v25  ;;  %v420_v27 = vpop.f32.mrb[21].mxu1 }
 0x168   :  { %v221_v28 = vpop.f32.mrb[22].mxu0  ;;  %v277_v29 = vpop.f32.mrb[22].mxu1 }
 0x169   :  { %292 = vst [vmem:[#allocation7 + $0x58] sm:$0xff] %v221_v28  ;;  %v393_v30 = vpop.f32.mrb[23].mxu0  ;;  %306 = vst [vmem:[#allocation7 + $0xc8] sm:$0xff] %v277_v29  ;;  %v421_v31 = vpop.f32.mrb[23].mxu1 }
 0x16e   :  { %v226_v32 = vpop.f32.mrb[24].mxu0 }
 0x16f   :  { %293 = vst [vmem:[#allocation7 + $0x60] sm:$0xff] %v226_v32  ;;  %v396_v33 = vpop.f32.mrb[25].mxu0 }
 0x170   :  { %v229_v34 = vpop.f32.mrb[26].mxu0 }
 0x171   :  { %294 = vst [vmem:[#allocation7 + $0x68] sm:$0xff] %v229_v34  ;;  %v397_v35 = vpop.f32.mrb[27].mxu0 }
 0x172   :  { %311 = vsyncadd [#allocation4], 128  ;;  %s535_s1 = smov [#allocation7]  }
 0x173   :  { %s312_s9 = sshll.u32 %s535_s1, 4  ;;  %s313_s9 = int_to_ptr.vmem [resolvable:$true] %s312_s9 }
 0x174   :  { %s499_s10 = scalar_lea.vmem %s313_s9, 3200  ;;  %s503_s11 = scalar_lea.vmem %s313_s9, 3328 }
 0x175   :  { %p500_p2 = scmp.ne.s32.totalorder %s313_s9, %s499_s10  ;;  %p504_p3 = scmp.lt.s32.totalorder %s313_s9, %s313_s9 }
 0x176   :  { %p505_p4 = scmp.lt.s32.totalorder %s503_s11, %s499_s10 }
 0x178   :  { %p506_p5 = por %p505_p4, %p504_p3 }
 0x17a   :  { %p507_p6 = pnand %p506_p5, %p500_p2 }
 0x17c   :  { %510 = shalt.err (!%p507_p6)
}
 0x17d   :  { %s511_s14 = scalar_lea.hbm %s637_s2, 3200 }
 0x17e   :  { %p512_p7 = scmp.ne.s32.totalorder %s637_s2, %s511_s14  ;;  %p515_p8 = scmp.lt.u32.totalorder %s511_s14, %s637_s2 }
 0x180   :  { %p517_p9 = pnand %p515_p8, %p512_p7 }
 0x182   :  { %520 = shalt.err (!%p517_p9)
}
 0x183   :  { %318 = dma.vmem_to_hbm [thread:$0]  %s313_s9, 3200, %s637_s2, [#allocation4], %s528_s20, %s528_s20, %s529_s21  }
 0x184   :  { %525 = dma.done.wait [#allocation4], 3328  }
 0x185   :  { %526 = vsyncadd [#allocation4], 4294963968 }
 0x186   :  { %322 = vsyncpa [#allocation3], 1 }
 0x187   :  { %323 = vsyncpa [#allocation6], 1 }
 0x188   :  { %324 = vsyncpa [#allocation4], 1 }

</bundles_post_ra>
